<compile_context>
chip_gen: v6e
topology: v6e:2x2x1
jax: 0.10.0
libtpu: 0.0.40
codegen_flags: <defaults>
</compile_context>

<pallas_src>
import functools

import jax
import jax.numpy as jnp
import numpy as np
from jax import lax
from jax.experimental import pallas as pl
from jax.experimental.pallas import tpu as pltpu


def _round_up(x, m):
    return ((x + m - 1) // m) * m


def _pad_gate_cols(w, H, Hp):
    """(..., 4H) -> (..., 4Hp): place each PyTorch gate block (i,f,g,o) of
    width H at column offset k*Hp, zero elsewhere, so every gate slice in the
    kernel is lane-aligned.  No-op when H == Hp (e.g. production H=768)."""
    if H == Hp:
        return w
    out = jnp.zeros(w.shape[:-1] + (4 * Hp,), w.dtype)
    for k in range(4):
        out = out.at[..., k * Hp:k * Hp + H].set(w[..., k * H:(k + 1) * H])
    return out


def _vmem_limit_bytes():
    """Chip-aware VMEM budget: ~75% of physical per-core VMEM, capped at
    100 MiB (v5e/v6e: 128 MiB physical; v7x: 64 MiB -> ~48 MiB budget)."""
    try:
        cap = getattr(pltpu.get_tpu_info(), "vmem_capacity_bytes",
                      64 * 1024 * 1024)
    except Exception:  # interpret mode / unknown chip
        cap = 64 * 1024 * 1024
    return int(max(16 * 1024 * 1024, min(cap * 3 // 4, 100 * 1024 * 1024)))


def lstm_chunk_kernel(x_ref, wih_hbm, whh_hbm, b_ref, h_out_ref,
                      gx_sc, wih_sc, whh_sc, h_sc, c_sc, dma_sem,
                      *, seq_len, chunk_steps, batch, unroll):
    """One grid step == one time-chunk of `chunk_steps` timesteps.
    Phase 1: gates_x = X_chunk @ W_ih^T + b   (one MXU matmul, bias folded).
    Phase 2: serial recurrence over the chunk; h/c carried in vregs and
             persisted across chunks in VMEM scratch."""
    Hp = h_sc.shape[1]        # padded hidden size (multiple of 128)
    ci = pl.program_id(0)     # time-chunk index

    # ---- one-time init: copy resident weights into VMEM (single copy, no
    # ---- auto-pipeline double-buffering) and zero the h/c carry ------------
    @pl.when(ci == 0)
    def _init():
        cp_ih = pltpu.make_async_copy(wih_hbm, wih_sc, dma_sem.at[0])
        cp_hh = pltpu.make_async_copy(whh_hbm, whh_sc, dma_sem.at[1])
        cp_ih.start()
        cp_hh.start()
        h_sc[...] = jnp.zeros_like(h_sc)
        c_sc[...] = jnp.zeros_like(c_sc)
        cp_ih.wait()
        cp_hh.wait()

    # ---- Phase 1: input projection for every timestep in this chunk --------
    gx_sc[...] = (
        jnp.dot(x_ref[...], wih_sc[...], preferred_element_type=jnp.float32)
        + b_ref[...]
    )

    # ---- Phase 2: serial time recurrence over the chunk ---------------------
    chunk_start = ci * chunk_steps

    def step(t, carry):
        h, c = carry
        row = pl.multiple_of(t * batch, batch)          # sublane-aligned start
        gates = gx_sc[pl.ds(row, batch), :] + jnp.dot(
            h.astype(jnp.bfloat16), whh_sc[...],
            preferred_element_type=jnp.float32)
        # Lane-aligned gate slices (Hp is a multiple of 128). PyTorch order.
        i_g = jax.nn.sigmoid(gates[:, 0 * Hp:1 * Hp])
        f_g = jax.nn.sigmoid(gates[:, 1 * Hp:2 * Hp])
        g_g = jnp.tanh(gates[:, 2 * Hp:3 * Hp])
        o_g = jax.nn.sigmoid(gates[:, 3 * Hp:4 * Hp])
        c_new = f_g * c + i_g * g_g
        h_new = o_g * jnp.tanh(c_new)
        # Mask zero-padded timesteps in the (possibly ragged) last chunk.
        valid = ((chunk_start + t) < seq_len).astype(jnp.float32)
        h = valid * h_new + (1.0 - valid) * h
        c = valid * c_new + (1.0 - valid) * c
        return (h, c)

    h, c = lax.fori_loop(0, chunk_steps, step, (h_sc[...], c_sc[...]),
                         unroll=unroll)
    h_sc[...] = h
    c_sc[...] = c
    # Output block index is constant -> stays resident in VMEM; lane-dense
    # (Bp, Hp) store every chunk, copied out to HBM once at the end.
    h_out_ref[...] = h.astype(h_out_ref.dtype)


def ques_embedding_lstm(hidden_states_bld, w_ih, w_hh, b_ih, b_hh,
                        *, chunk_steps=64):
    """hidden_states_bld: (B, L, D) — PhoBERT last_hidden_state equivalent.
    Returns the final LSTM hidden state, shape (B, H) (== h.squeeze(0))."""
    B, L, D = hidden_states_bld.shape
    H = w_hh.shape[1]
    assert L >= 1
    assert w_ih.shape == (4 * H, D) and w_hh.shape == (4 * H, H)

    Bp = _round_up(max(B, 1), 8)   # sublane-aligned batch tile
    Hp = _round_up(H, 128)         # lane-aligned hidden (PhoBERT H=768 already is)

    # Time-chunk length: even (bf16 16-row sublane packing of (T*Bp, D) blocks),
    # >= 2, <= chunk_steps.  Kernel VMEM scales with T, not L.
    T = _round_up(max(2, min(chunk_steps, L)), 2)
    num_chunks = -(-L // T)
    Lp = num_chunks * T

    # Unroll tuned for vreg pressure (review): one step keeps a (Bp, 4Hp) fp32
    # gates tile plus the h/c carry live; full-ish unroll only for tiny Hp.
    unroll = 8 if Hp <= 128 else (4 if Hp <= 256 else 2)
    unroll = max(1, min(unroll, T))

    # ---- layout / parameter prep (plain JAX glue) ---------------------------
    x = jnp.transpose(hidden_states_bld, (1, 0, 2))          # (L, B, D)
    x = jnp.pad(x, ((0, Lp - L), (0, Bp - B), (0, 0)))       # (Lp, Bp, D)
    x = x.reshape(Lp * Bp, D).astype(jnp.bfloat16)           # bf16 MXU operand

    wih_t = _pad_gate_cols(jnp.transpose(w_ih), H, Hp).astype(jnp.bfloat16)  # (D, 4Hp)
    whh_t = jnp.pad(jnp.transpose(w_hh), ((0, Hp - H), (0, 0)))              # (Hp, 4H)
    whh_t = _pad_gate_cols(whh_t, H, Hp).astype(jnp.bfloat16)                # (Hp, 4Hp)
    bias = _pad_gate_cols((b_ih + b_hh).reshape(1, 4 * H), H, Hp)
    bias = bias.astype(jnp.float32)                                          # (1, 4Hp)

    kernel = functools.partial(lstm_chunk_kernel, seq_len=L, chunk_steps=T,
                               batch=Bp, unroll=unroll)

    h_padded = pl.pallas_call(
        kernel,
        out_shape=jax.ShapeDtypeStruct((Bp, Hp), jnp.float32),
        grid_spec=pltpu.PrefetchScalarGridSpec(
            num_scalar_prefetch=0,
            grid=(num_chunks,),
            in_specs=[
                # x: pipelined per chunk -> DMA of chunk i+1 overlaps chunk i.
                pl.BlockSpec((T * Bp, D), lambda i: (i, 0)),
                # Weights stay in HBM; copied once into VMEM scratch inside the
                # kernel (avoids 2x auto-pipeline buffering of resident data).
                pl.BlockSpec(memory_space=pl.ANY),
                pl.BlockSpec(memory_space=pl.ANY),
                # Bias is tiny -> normal resident block.
                pl.BlockSpec((1, 4 * Hp), lambda i: (0, 0)),
            ],
            out_specs=pl.BlockSpec((Bp, Hp), lambda i: (0, 0)),  # lane-dense slab
            scratch_shapes=[
                pltpu.VMEM((T * Bp, 4 * Hp), jnp.float32),    # gates_x (per chunk)
                pltpu.VMEM((D, 4 * Hp), jnp.bfloat16),        # resident W_ih^T
                pltpu.VMEM((Hp, 4 * Hp), jnp.bfloat16),       # resident W_hh^T
                pltpu.VMEM((Bp, Hp), jnp.float32),            # h carry
                pltpu.VMEM((Bp, Hp), jnp.float32),            # c carry
                pltpu.SemaphoreType.DMA((2,)),                # weight-copy sems
            ],
        ),
        compiler_params=pltpu.CompilerParams(
            dimension_semantics=("arbitrary",),   # time recurrence is serial
            vmem_limit_bytes=_vmem_limit_bytes(),
        ),
    )(x, wih_t, whh_t, bias)

    return h_padded[:B, :H].astype(hidden_states_bld.dtype)


def lstm_reference(x_bld, w_ih, w_hh, b_ih, b_hh):
    """Pure-JAX fp32 reference matching torch.nn.LSTM (single layer, zero init)."""
    B, L, D = x_bld.shape
    H = w_hh.shape[1]
    bias = b_ih + b_hh

    def step(carry, x_t):
        h, c = carry
        gates = x_t @ w_ih.T + h @ w_hh.T + bias
        i = jax.nn.sigmoid(gates[:, 0 * H:1 * H])
        f = jax.nn.sigmoid(gates[:, 1 * H:2 * H])
        g = jnp.tanh(gates[:, 2 * H:3 * H])
        o = jax.nn.sigmoid(gates[:, 3 * H:4 * H])
        c = f * c + i * g
        h = o * jnp.tanh(c)
        return (h, c), None

    h0 = jnp.zeros((B, H), jnp.float32)
    c0 = jnp.zeros((B, H), jnp.float32)
    (h, _), _ = lax.scan(step, (h0, c0), jnp.transpose(x_bld, (1, 0, 2)))
    return h


if __name__ == "__main__":
    # Small shapes consistent with the module: batch=2, hidden=32.  seq=10 with
    # chunk_steps=4 exercises multiple time-chunks AND the ragged-tail mask.
    B, L, D, H = 2, 10, 32, 32

    key = jax.random.PRNGKey(0)
    k_x, k_wih, k_whh, k_bih, k_bhh = jax.random.split(key, 5)

    # Synthetic stand-in for PhoBERT's last_hidden_state (B, L, D).
    # TODO(synk): tokenizer + pretrained PhoBERT transformer are not translatable
    #             to a Pallas kernel; the kernel consumes their output tensor.
    x = jax.random.normal(k_x, (B, L, D), jnp.float32)

    # Deterministic LSTM parameters (PyTorch nn.LSTM shapes: 4H x D, 4H x H, 4H).
    scale = 1.0 / np.sqrt(H)
    w_ih = jax.random.uniform(k_wih, (4 * H, D), jnp.float32, -scale, scale)
    w_hh = jax.random.uniform(k_whh, (4 * H, H), jnp.float32, -scale, scale)
    b_ih = jax.random.uniform(k_bih, (4 * H,), jnp.float32, -scale, scale)
    b_hh = jax.random.uniform(k_bhh, (4 * H,), jnp.float32, -scale, scale)

    h_pallas = ques_embedding_lstm(x, w_ih, w_hh, b_ih, b_hh, chunk_steps=4)
    h_pallas = jax.block_until_ready(h_pallas)

    h_ref = lstm_reference(x, w_ih, w_hh, b_ih, b_hh)
    # bf16 MXU operands (fp32 accumulation) and per-step bf16 recast of h ->
    # loosened tolerance vs the fp32 reference.
    if not np.allclose(np.asarray(h_pallas), np.asarray(h_ref),
                       atol=4e-2, rtol=4e-2):
        diff = np.max(np.abs(np.asarray(h_pallas) - np.asarray(h_ref)))
        raise AssertionError(
            f"Pallas LSTM output mismatch vs reference, max|diff|={diff}")

    assert h_pallas.shape == (B, H)
    print("KERNEL_OK")
</pallas_src>

<mosaic_0001>
module attributes {stable_mosaic.version = 11 : i64} {
  func.func @lstm_chunk_kernel(%arg0: i32, %arg1: memref<32x32xbf16, #tpu.memory_space<vmem>>, %arg2: memref<32x512xbf16, #tpu.memory_space<any>>, %arg3: memref<128x512xbf16, #tpu.memory_space<any>>, %arg4: memref<1x512xf32, #tpu.memory_space<vmem>>, %arg5: memref<8x128xf32, #tpu.memory_space<vmem>>, %arg6: memref<32x512xf32, #tpu.memory_space<vmem>>, %arg7: memref<32x512xbf16, #tpu.memory_space<vmem>>, %arg8: memref<128x512xbf16, #tpu.memory_space<vmem>>, %arg9: memref<8x128xf32, #tpu.memory_space<vmem>>, %arg10: memref<8x128xf32, #tpu.memory_space<vmem>>, %arg11: memref<2x!tpu.dma_semaphore, #tpu.memory_space<semaphore_mem>>) attributes {dimension_semantics = [#tpu.dimension_semantics<arbitrary>], iteration_bounds = array<i64: 3>, scalar_prefetch = 0 : i64, scratch_operands = 6 : i64, tpu.core_type = #tpu.core_type<tc>, window_params = [{transform_indices = @transform_0, window_bounds = array<i64: 32, 32>}, {}, {}, {pipeline_mode = #tpu.pipeline_mode<synchronous>, transform_indices = @transform_3, window_bounds = array<i64: 1, 512>}, {pipeline_mode = #tpu.pipeline_mode<synchronous>, transform_indices = @transform_4, window_bounds = array<i64: 8, 128>}]} {
    %c0_i32 = arith.constant 0 : i32
    %0 = arith.cmpi eq, %arg0, %c0_i32 : i32
    %1 = arith.extui %0 : i1 to i32
    %c0_i32_0 = arith.constant 0 : i32
    %2 = arith.cmpi ne, %1, %c0_i32_0 : i32
    scf.if %2 {
      %c0_i32_62 = arith.constant 0 : i32
      %212 = tpu.memref_slice %arg11[%c0_i32_62] : memref<2x!tpu.dma_semaphore, #tpu.memory_space<semaphore_mem>> -> memref<1x!tpu.dma_semaphore, #tpu.memory_space<semaphore_mem>>
      %213 = tpu.memref_squeeze %212 : memref<1x!tpu.dma_semaphore, #tpu.memory_space<semaphore_mem>> -> memref<!tpu.dma_semaphore, #tpu.memory_space<semaphore_mem>>
      tpu.enqueue_dma source(%arg2 : memref<32x512xbf16, #tpu.memory_space<any>>) target(%arg7 : memref<32x512xbf16, #tpu.memory_space<vmem>>) target_semaphore(%213 : memref<!tpu.dma_semaphore, #tpu.memory_space<semaphore_mem>>)
      %c1_i32_63 = arith.constant 1 : i32
      %214 = tpu.memref_slice %arg11[%c1_i32_63] : memref<2x!tpu.dma_semaphore, #tpu.memory_space<semaphore_mem>> -> memref<1x!tpu.dma_semaphore, #tpu.memory_space<semaphore_mem>>
      %215 = tpu.memref_squeeze %214 : memref<1x!tpu.dma_semaphore, #tpu.memory_space<semaphore_mem>> -> memref<!tpu.dma_semaphore, #tpu.memory_space<semaphore_mem>>
      tpu.enqueue_dma source(%arg3 : memref<128x512xbf16, #tpu.memory_space<any>>) target(%arg8 : memref<128x512xbf16, #tpu.memory_space<vmem>>) target_semaphore(%215 : memref<!tpu.dma_semaphore, #tpu.memory_space<semaphore_mem>>)
      %cst_64 = arith.constant 0.000000e+00 : f32
      %216 = vector.broadcast %cst_64 : f32 to vector<8x128xf32>
      %c0_65 = arith.constant 0 : index
      %c0_66 = arith.constant 0 : index
      %217 = vector.load %arg9[%c0_65, %c0_66] : memref<8x128xf32, #tpu.memory_space<vmem>>, vector<8x128xf32>
      tpu.vector_store %arg9[%c0_65, %c0_66], %216 {strides = array<i32>} : memref<8x128xf32, #tpu.memory_space<vmem>>, vector<8x128xf32>,
      %cst_67 = arith.constant 0.000000e+00 : f32
      %218 = vector.broadcast %cst_67 : f32 to vector<8x128xf32>
      %c0_68 = arith.constant 0 : index
      %c0_69 = arith.constant 0 : index
      %219 = vector.load %arg10[%c0_68, %c0_69] : memref<8x128xf32, #tpu.memory_space<vmem>>, vector<8x128xf32>
      tpu.vector_store %arg10[%c0_68, %c0_69], %218 {strides = array<i32>} : memref<8x128xf32, #tpu.memory_space<vmem>>, vector<8x128xf32>,
      %c0_i32_70 = arith.constant 0 : i32
      %220 = tpu.memref_slice %arg11[%c0_i32_70] : memref<2x!tpu.dma_semaphore, #tpu.memory_space<semaphore_mem>> -> memref<1x!tpu.dma_semaphore, #tpu.memory_space<semaphore_mem>>
      %221 = tpu.memref_squeeze %220 : memref<1x!tpu.dma_semaphore, #tpu.memory_space<semaphore_mem>> -> memref<!tpu.dma_semaphore, #tpu.memory_space<semaphore_mem>>
      tpu.wait_dma2 semaphore(%221 : memref<!tpu.dma_semaphore, #tpu.memory_space<semaphore_mem>>) src(%arg2 : memref<32x512xbf16, #tpu.memory_space<any>>) dst(%arg7 : memref<32x512xbf16, #tpu.memory_space<vmem>>)
      %c1_i32_71 = arith.constant 1 : i32
      %222 = tpu.memref_slice %arg11[%c1_i32_71] : memref<2x!tpu.dma_semaphore, #tpu.memory_space<semaphore_mem>> -> memref<1x!tpu.dma_semaphore, #tpu.memory_space<semaphore_mem>>
      %223 = tpu.memref_squeeze %222 : memref<1x!tpu.dma_semaphore, #tpu.memory_space<semaphore_mem>> -> memref<!tpu.dma_semaphore, #tpu.memory_space<semaphore_mem>>
      tpu.wait_dma2 semaphore(%223 : memref<!tpu.dma_semaphore, #tpu.memory_space<semaphore_mem>>) src(%arg3 : memref<128x512xbf16, #tpu.memory_space<any>>) dst(%arg8 : memref<128x512xbf16, #tpu.memory_space<vmem>>)
    } else {
    }
    %c0 = arith.constant 0 : index
    %c0_1 = arith.constant 0 : index
    %3 = vector.load %arg1[%c0, %c0_1] : memref<32x32xbf16, #tpu.memory_space<vmem>>, vector<32x32xbf16>
    %c0_2 = arith.constant 0 : index
    %c0_3 = arith.constant 0 : index
    %4 = vector.load %arg7[%c0_2, %c0_3] : memref<32x512xbf16, #tpu.memory_space<vmem>>, vector<32x512xbf16>
    %cst = arith.constant dense<0.000000e+00> : vector<32x512xf32>
    %5 = tpu.matmul %3, %4, %cst {dimension_numbers = #tpu.dot_dimension_numbers<[1], [0], [0], [1], [0, 0, 1, 1], [], []>} : vector<32x32xbf16>, vector<32x512xbf16>, vector<32x512xf32> -> vector<32x512xf32>
    %c0_4 = arith.constant 0 : index
    %c0_5 = arith.constant 0 : index
    %6 = vector.load %arg4[%c0_4, %c0_5] : memref<1x512xf32, #tpu.memory_space<vmem>>, vector<1x512xf32>
    %7 = vector.broadcast %6 : vector<1x512xf32> to vector<32x512xf32>
    %8 = arith.addf %5, %7 : vector<32x512xf32>
    %c0_6 = arith.constant 0 : index
    %c0_7 = arith.constant 0 : index
    %9 = vector.load %arg6[%c0_6, %c0_7] : memref<32x512xf32, #tpu.memory_space<vmem>>, vector<32x512xf32>
    tpu.vector_store %arg6[%c0_6, %c0_7], %8 {strides = array<i32>} : memref<32x512xf32, #tpu.memory_space<vmem>>, vector<32x512xf32>,
    %c4_i32 = arith.constant 4 : i32
    %10 = arith.muli %arg0, %c4_i32 : i32
    %c0_8 = arith.constant 0 : index
    %c0_9 = arith.constant 0 : index
    %11 = vector.load %arg9[%c0_8, %c0_9] : memref<8x128xf32, #tpu.memory_space<vmem>>, vector<8x128xf32>
    %c0_10 = arith.constant 0 : index
    %c0_11 = arith.constant 0 : index
    %12 = vector.load %arg10[%c0_10, %c0_11] : memref<8x128xf32, #tpu.memory_space<vmem>>, vector<8x128xf32>
    %c0_i32_12 = arith.constant 0 : i32
    %c8_i32 = arith.constant 8 : i32
    %13 = arith.muli %c0_i32_12, %c8_i32 : i32
    %14 = tpu.assume_multiple %13, 8 : i32
    %15 = arith.index_cast %14 : i32 to index
    %c0_13 = arith.constant 0 : index
    %16 = vector.load %arg6[%15, %c0_13] : memref<32x512xf32, #tpu.memory_space<vmem>>, vector<8x512xf32>
    %17 = arith.truncf %11 : vector<8x128xf32> to vector<8x128xbf16>
    %c0_14 = arith.constant 0 : index
    %c0_15 = arith.constant 0 : index
    %18 = vector.load %arg8[%c0_14, %c0_15] : memref<128x512xbf16, #tpu.memory_space<vmem>>, vector<128x512xbf16>
    %cst_16 = arith.constant dense<0.000000e+00> : vector<8x512xf32>
    %19 = tpu.matmul %17, %18, %cst_16 {dimension_numbers = #tpu.dot_dimension_numbers<[1], [0], [0], [1], [0, 0, 1, 1], [], []>} : vector<8x128xbf16>, vector<128x512xbf16>, vector<8x512xf32> -> vector<8x512xf32>
    %20 = arith.addf %16, %19 : vector<8x512xf32>
    %21 = vector.extract_strided_slice %20 {offsets = [0, 0], sizes = [8, 128], strides = [1, 1]} : vector<8x512xf32> to vector<8x128xf32>
    %22 = arith.negf %21 : vector<8x128xf32>
    %23 = math.exp %22 : vector<8x128xf32>
    %cst_17 = arith.constant 1.000000e+00 : f32
    %24 = vector.broadcast %cst_17 : f32 to vector<8x128xf32>
    %25 = arith.addf %24, %23 : vector<8x128xf32>
    %26 = arith.divf %24, %25 : vector<8x128xf32>
    %27 = vector.extract_strided_slice %20 {offsets = [0, 128], sizes = [8, 128], strides = [1, 1]} : vector<8x512xf32> to vector<8x128xf32>
    %28 = arith.negf %27 : vector<8x128xf32>
    %29 = math.exp %28 : vector<8x128xf32>
    %cst_18 = arith.constant 1.000000e+00 : f32
    %30 = vector.broadcast %cst_18 : f32 to vector<8x128xf32>
    %31 = arith.addf %30, %29 : vector<8x128xf32>
    %32 = arith.divf %30, %31 : vector<8x128xf32>
    %33 = vector.extract_strided_slice %20 {offsets = [0, 256], sizes = [8, 128], strides = [1, 1]} : vector<8x512xf32> to vector<8x128xf32>
    %34 = math.tanh %33 : vector<8x128xf32>
    %35 = vector.extract_strided_slice %20 {offsets = [0, 384], sizes = [8, 128], strides = [1, 1]} : vector<8x512xf32> to vector<8x128xf32>
    %36 = arith.negf %35 : vector<8x128xf32>
    %37 = math.exp %36 : vector<8x128xf32>
    %cst_19 = arith.constant 1.000000e+00 : f32
    %38 = vector.broadcast %cst_19 : f32 to vector<8x128xf32>
    %39 = arith.addf %38, %37 : vector<8x128xf32>
    %40 = arith.divf %38, %39 : vector<8x128xf32>
    %41 = arith.mulf %32, %12 : vector<8x128xf32>
    %42 = arith.mulf %26, %34 : vector<8x128xf32>
    %43 = arith.addf %41, %42 : vector<8x128xf32>
    %44 = math.tanh %43 : vector<8x128xf32>
    %45 = arith.mulf %40, %44 : vector<8x128xf32>
    %46 = arith.addi %10, %c0_i32_12 : i32
    %c10_i32 = arith.constant 10 : i32
    %47 = arith.cmpi slt, %46, %c10_i32 : i32
    %48 = arith.extui %47 : i1 to i32
    %49 = arith.sitofp %48 : i32 to f32
    %50 = vector.broadcast %49 : f32 to vector<8x128xf32>
    %51 = arith.mulf %50, %45 : vector<8x128xf32>
    %cst_20 = arith.constant 1.000000e+00 : f32
    %52 = arith.subf %cst_20, %49 : f32
    %53 = vector.broadcast %52 : f32 to vector<8x128xf32>
    %54 = arith.mulf %53, %11 : vector<8x128xf32>
    %55 = arith.addf %51, %54 : vector<8x128xf32>
    %56 = vector.broadcast %49 : f32 to vector<8x128xf32>
    %57 = arith.mulf %56, %43 : vector<8x128xf32>
    %cst_21 = arith.constant 1.000000e+00 : f32
    %58 = arith.subf %cst_21, %49 : f32
    %59 = vector.broadcast %58 : f32 to vector<8x128xf32>
    %60 = arith.mulf %59, %12 : vector<8x128xf32>
    %61 = arith.addf %57, %60 : vector<8x128xf32>
    %c1_i32 = arith.constant 1 : i32
    %c8_i32_22 = arith.constant 8 : i32
    %62 = arith.muli %c1_i32, %c8_i32_22 : i32
    %63 = tpu.assume_multiple %62, 8 : i32
    %64 = arith.index_cast %63 : i32 to index
    %c0_23 = arith.constant 0 : index
    %65 = vector.load %arg6[%64, %c0_23] : memref<32x512xf32, #tpu.memory_space<vmem>>, vector<8x512xf32>
    %66 = arith.truncf %55 : vector<8x128xf32> to vector<8x128xbf16>
    %c0_24 = arith.constant 0 : index
    %c0_25 = arith.constant 0 : index
    %67 = vector.load %arg8[%c0_24, %c0_25] : memref<128x512xbf16, #tpu.memory_space<vmem>>, vector<128x512xbf16>
    %cst_26 = arith.constant dense<0.000000e+00> : vector<8x512xf32>
    %68 = tpu.matmul %66, %67, %cst_26 {dimension_numbers = #tpu.dot_dimension_numbers<[1], [0], [0], [1], [0, 0, 1, 1], [], []>} : vector<8x128xbf16>, vector<128x512xbf16>, vector<8x512xf32> -> vector<8x512xf32>
    %69 = arith.addf %65, %68 : vector<8x512xf32>
    %70 = vector.extract_strided_slice %69 {offsets = [0, 0], sizes = [8, 128], strides = [1, 1]} : vector<8x512xf32> to vector<8x128xf32>
    %71 = arith.negf %70 : vector<8x128xf32>
    %72 = math.exp %71 : vector<8x128xf32>
    %cst_27 = arith.constant 1.000000e+00 : f32
    %73 = vector.broadcast %cst_27 : f32 to vector<8x128xf32>
    %74 = arith.addf %73, %72 : vector<8x128xf32>
    %75 = arith.divf %73, %74 : vector<8x128xf32>
    %76 = vector.extract_strided_slice %69 {offsets = [0, 128], sizes = [8, 128], strides = [1, 1]} : vector<8x512xf32> to vector<8x128xf32>
    %77 = arith.negf %76 : vector<8x128xf32>
    %78 = math.exp %77 : vector<8x128xf32>
    %cst_28 = arith.constant 1.000000e+00 : f32
    %79 = vector.broadcast %cst_28 : f32 to vector<8x128xf32>
    %80 = arith.addf %79, %78 : vector<8x128xf32>
    %81 = arith.divf %79, %80 : vector<8x128xf32>
    %82 = vector.extract_strided_slice %69 {offsets = [0, 256], sizes = [8, 128], strides = [1, 1]} : vector<8x512xf32> to vector<8x128xf32>
    %83 = math.tanh %82 : vector<8x128xf32>
    %84 = vector.extract_strided_slice %69 {offsets = [0, 384], sizes = [8, 128], strides = [1, 1]} : vector<8x512xf32> to vector<8x128xf32>
    %85 = arith.negf %84 : vector<8x128xf32>
    %86 = math.exp %85 : vector<8x128xf32>
    %cst_29 = arith.constant 1.000000e+00 : f32
    %87 = vector.broadcast %cst_29 : f32 to vector<8x128xf32>
    %88 = arith.addf %87, %86 : vector<8x128xf32>
    %89 = arith.divf %87, %88 : vector<8x128xf32>
    %90 = arith.mulf %81, %61 : vector<8x128xf32>
    %91 = arith.mulf %75, %83 : vector<8x128xf32>
    %92 = arith.addf %90, %91 : vector<8x128xf32>
    %93 = math.tanh %92 : vector<8x128xf32>
    %94 = arith.mulf %89, %93 : vector<8x128xf32>
    %95 = arith.addi %10, %c1_i32 : i32
    %c10_i32_30 = arith.constant 10 : i32
    %96 = arith.cmpi slt, %95, %c10_i32_30 : i32
    %97 = arith.extui %96 : i1 to i32
    %98 = arith.sitofp %97 : i32 to f32
    %99 = vector.broadcast %98 : f32 to vector<8x128xf32>
    %100 = arith.mulf %99, %94 : vector<8x128xf32>
    %cst_31 = arith.constant 1.000000e+00 : f32
    %101 = arith.subf %cst_31, %98 : f32
    %102 = vector.broadcast %101 : f32 to vector<8x128xf32>
    %103 = arith.mulf %102, %55 : vector<8x128xf32>
    %104 = arith.addf %100, %103 : vector<8x128xf32>
    %105 = vector.broadcast %98 : f32 to vector<8x128xf32>
    %106 = arith.mulf %105, %92 : vector<8x128xf32>
    %cst_32 = arith.constant 1.000000e+00 : f32
    %107 = arith.subf %cst_32, %98 : f32
    %108 = vector.broadcast %107 : f32 to vector<8x128xf32>
    %109 = arith.mulf %108, %61 : vector<8x128xf32>
    %110 = arith.addf %106, %109 : vector<8x128xf32>
    %c2_i32 = arith.constant 2 : i32
    %c8_i32_33 = arith.constant 8 : i32
    %111 = arith.muli %c2_i32, %c8_i32_33 : i32
    %112 = tpu.assume_multiple %111, 8 : i32
    %113 = arith.index_cast %112 : i32 to index
    %c0_34 = arith.constant 0 : index
    %114 = vector.load %arg6[%113, %c0_34] : memref<32x512xf32, #tpu.memory_space<vmem>>, vector<8x512xf32>
    %115 = arith.truncf %104 : vector<8x128xf32> to vector<8x128xbf16>
    %c0_35 = arith.constant 0 : index
    %c0_36 = arith.constant 0 : index
    %116 = vector.load %arg8[%c0_35, %c0_36] : memref<128x512xbf16, #tpu.memory_space<vmem>>, vector<128x512xbf16>
    %cst_37 = arith.constant dense<0.000000e+00> : vector<8x512xf32>
    %117 = tpu.matmul %115, %116, %cst_37 {dimension_numbers = #tpu.dot_dimension_numbers<[1], [0], [0], [1], [0, 0, 1, 1], [], []>} : vector<8x128xbf16>, vector<128x512xbf16>, vector<8x512xf32> -> vector<8x512xf32>
    %118 = arith.addf %114, %117 : vector<8x512xf32>
    %119 = vector.extract_strided_slice %118 {offsets = [0, 0], sizes = [8, 128], strides = [1, 1]} : vector<8x512xf32> to vector<8x128xf32>
    %120 = arith.negf %119 : vector<8x128xf32>
    %121 = math.exp %120 : vector<8x128xf32>
    %cst_38 = arith.constant 1.000000e+00 : f32
    %122 = vector.broadcast %cst_38 : f32 to vector<8x128xf32>
    %123 = arith.addf %122, %121 : vector<8x128xf32>
    %124 = arith.divf %122, %123 : vector<8x128xf32>
    %125 = vector.extract_strided_slice %118 {offsets = [0, 128], sizes = [8, 128], strides = [1, 1]} : vector<8x512xf32> to vector<8x128xf32>
    %126 = arith.negf %125 : vector<8x128xf32>
    %127 = math.exp %126 : vector<8x128xf32>
    %cst_39 = arith.constant 1.000000e+00 : f32
    %128 = vector.broadcast %cst_39 : f32 to vector<8x128xf32>
    %129 = arith.addf %128, %127 : vector<8x128xf32>
    %130 = arith.divf %128, %129 : vector<8x128xf32>
    %131 = vector.extract_strided_slice %118 {offsets = [0, 256], sizes = [8, 128], strides = [1, 1]} : vector<8x512xf32> to vector<8x128xf32>
    %132 = math.tanh %131 : vector<8x128xf32>
    %133 = vector.extract_strided_slice %118 {offsets = [0, 384], sizes = [8, 128], strides = [1, 1]} : vector<8x512xf32> to vector<8x128xf32>
    %134 = arith.negf %133 : vector<8x128xf32>
    %135 = math.exp %134 : vector<8x128xf32>
    %cst_40 = arith.constant 1.000000e+00 : f32
    %136 = vector.broadcast %cst_40 : f32 to vector<8x128xf32>
    %137 = arith.addf %136, %135 : vector<8x128xf32>
    %138 = arith.divf %136, %137 : vector<8x128xf32>
    %139 = arith.mulf %130, %110 : vector<8x128xf32>
    %140 = arith.mulf %124, %132 : vector<8x128xf32>
    %141 = arith.addf %139, %140 : vector<8x128xf32>
    %142 = math.tanh %141 : vector<8x128xf32>
    %143 = arith.mulf %138, %142 : vector<8x128xf32>
    %144 = arith.addi %10, %c2_i32 : i32
    %c10_i32_41 = arith.constant 10 : i32
    %145 = arith.cmpi slt, %144, %c10_i32_41 : i32
    %146 = arith.extui %145 : i1 to i32
    %147 = arith.sitofp %146 : i32 to f32
    %148 = vector.broadcast %147 : f32 to vector<8x128xf32>
    %149 = arith.mulf %148, %143 : vector<8x128xf32>
    %cst_42 = arith.constant 1.000000e+00 : f32
    %150 = arith.subf %cst_42, %147 : f32
    %151 = vector.broadcast %150 : f32 to vector<8x128xf32>
    %152 = arith.mulf %151, %104 : vector<8x128xf32>
    %153 = arith.addf %149, %152 : vector<8x128xf32>
    %154 = vector.broadcast %147 : f32 to vector<8x128xf32>
    %155 = arith.mulf %154, %141 : vector<8x128xf32>
    %cst_43 = arith.constant 1.000000e+00 : f32
    %156 = arith.subf %cst_43, %147 : f32
    %157 = vector.broadcast %156 : f32 to vector<8x128xf32>
    %158 = arith.mulf %157, %110 : vector<8x128xf32>
    %159 = arith.addf %155, %158 : vector<8x128xf32>
    %c3_i32 = arith.constant 3 : i32
    %c8_i32_44 = arith.constant 8 : i32
    %160 = arith.muli %c3_i32, %c8_i32_44 : i32
    %161 = tpu.assume_multiple %160, 8 : i32
    %162 = arith.index_cast %161 : i32 to index
    %c0_45 = arith.constant 0 : index
    %163 = vector.load %arg6[%162, %c0_45] : memref<32x512xf32, #tpu.memory_space<vmem>>, vector<8x512xf32>
    %164 = arith.truncf %153 : vector<8x128xf32> to vector<8x128xbf16>
    %c0_46 = arith.constant 0 : index
    %c0_47 = arith.constant 0 : index
    %165 = vector.load %arg8[%c0_46, %c0_47] : memref<128x512xbf16, #tpu.memory_space<vmem>>, vector<128x512xbf16>
    %cst_48 = arith.constant dense<0.000000e+00> : vector<8x512xf32>
    %166 = tpu.matmul %164, %165, %cst_48 {dimension_numbers = #tpu.dot_dimension_numbers<[1], [0], [0], [1], [0, 0, 1, 1], [], []>} : vector<8x128xbf16>, vector<128x512xbf16>, vector<8x512xf32> -> vector<8x512xf32>
    %167 = arith.addf %163, %166 : vector<8x512xf32>
    %168 = vector.extract_strided_slice %167 {offsets = [0, 0], sizes = [8, 128], strides = [1, 1]} : vector<8x512xf32> to vector<8x128xf32>
    %169 = arith.negf %168 : vector<8x128xf32>
    %170 = math.exp %169 : vector<8x128xf32>
    %cst_49 = arith.constant 1.000000e+00 : f32
    %171 = vector.broadcast %cst_49 : f32 to vector<8x128xf32>
    %172 = arith.addf %171, %170 : vector<8x128xf32>
    %173 = arith.divf %171, %172 : vector<8x128xf32>
    %174 = vector.extract_strided_slice %167 {offsets = [0, 128], sizes = [8, 128], strides = [1, 1]} : vector<8x512xf32> to vector<8x128xf32>
    %175 = arith.negf %174 : vector<8x128xf32>
    %176 = math.exp %175 : vector<8x128xf32>
    %cst_50 = arith.constant 1.000000e+00 : f32
    %177 = vector.broadcast %cst_50 : f32 to vector<8x128xf32>
    %178 = arith.addf %177, %176 : vector<8x128xf32>
    %179 = arith.divf %177, %178 : vector<8x128xf32>
    %180 = vector.extract_strided_slice %167 {offsets = [0, 256], sizes = [8, 128], strides = [1, 1]} : vector<8x512xf32> to vector<8x128xf32>
    %181 = math.tanh %180 : vector<8x128xf32>
    %182 = vector.extract_strided_slice %167 {offsets = [0, 384], sizes = [8, 128], strides = [1, 1]} : vector<8x512xf32> to vector<8x128xf32>
    %183 = arith.negf %182 : vector<8x128xf32>
    %184 = math.exp %183 : vector<8x128xf32>
    %cst_51 = arith.constant 1.000000e+00 : f32
    %185 = vector.broadcast %cst_51 : f32 to vector<8x128xf32>
    %186 = arith.addf %185, %184 : vector<8x128xf32>
    %187 = arith.divf %185, %186 : vector<8x128xf32>
    %188 = arith.mulf %179, %159 : vector<8x128xf32>
    %189 = arith.mulf %173, %181 : vector<8x128xf32>
    %190 = arith.addf %188, %189 : vector<8x128xf32>
    %191 = math.tanh %190 : vector<8x128xf32>
    %192 = arith.mulf %187, %191 : vector<8x128xf32>
    %193 = arith.addi %10, %c3_i32 : i32
    %c10_i32_52 = arith.constant 10 : i32
    %194 = arith.cmpi slt, %193, %c10_i32_52 : i32
    %195 = arith.extui %194 : i1 to i32
    %196 = arith.sitofp %195 : i32 to f32
    %197 = vector.broadcast %196 : f32 to vector<8x128xf32>
    %198 = arith.mulf %197, %192 : vector<8x128xf32>
    %cst_53 = arith.constant 1.000000e+00 : f32
    %199 = arith.subf %cst_53, %196 : f32
    %200 = vector.broadcast %199 : f32 to vector<8x128xf32>
    %201 = arith.mulf %200, %153 : vector<8x128xf32>
    %202 = arith.addf %198, %201 : vector<8x128xf32>
    %203 = vector.broadcast %196 : f32 to vector<8x128xf32>
    %204 = arith.mulf %203, %190 : vector<8x128xf32>
    %cst_54 = arith.constant 1.000000e+00 : f32
    %205 = arith.subf %cst_54, %196 : f32
    %206 = vector.broadcast %205 : f32 to vector<8x128xf32>
    %207 = arith.mulf %206, %159 : vector<8x128xf32>
    %208 = arith.addf %204, %207 : vector<8x128xf32>
    %c4_i32_55 = arith.constant 4 : i32
    %c0_56 = arith.constant 0 : index
    %c0_57 = arith.constant 0 : index
    %209 = vector.load %arg9[%c0_56, %c0_57] : memref<8x128xf32, #tpu.memory_space<vmem>>, vector<8x128xf32>
    tpu.vector_store %arg9[%c0_56, %c0_57], %202 {strides = array<i32>} : memref<8x128xf32, #tpu.memory_space<vmem>>, vector<8x128xf32>,
    %c0_58 = arith.constant 0 : index
    %c0_59 = arith.constant 0 : index
    %210 = vector.load %arg10[%c0_58, %c0_59] : memref<8x128xf32, #tpu.memory_space<vmem>>, vector<8x128xf32>
    tpu.vector_store %arg10[%c0_58, %c0_59], %208 {strides = array<i32>} : memref<8x128xf32, #tpu.memory_space<vmem>>, vector<8x128xf32>,
    %c0_60 = arith.constant 0 : index
    %c0_61 = arith.constant 0 : index
    %211 = vector.load %arg5[%c0_60, %c0_61] : memref<8x128xf32, #tpu.memory_space<vmem>>, vector<8x128xf32>
    tpu.vector_store %arg5[%c0_60, %c0_61], %202 {strides = array<i32>} : memref<8x128xf32, #tpu.memory_space<vmem>>, vector<8x128xf32>,
    return
  }
  func.func @transform_0(%arg0: i32) -> (i32, i32) {
    %c0_i32 = arith.constant 0 : i32
    %c0_i32_0 = arith.constant 0 : i32
    return %arg0, %c0_i32 : i32, i32
  }
  func.func @transform_3(%arg0: i32) -> (i32, i32) {
    %c0_i32 = arith.constant 0 : i32
    %c0_i32_0 = arith.constant 0 : i32
    %c0_i32_1 = arith.constant 0 : i32
    return %c0_i32, %c0_i32_0 : i32, i32
  }
  func.func @transform_4(%arg0: i32) -> (i32, i32) {
    %c0_i32 = arith.constant 0 : i32
    %c0_i32_0 = arith.constant 0 : i32
    %c0_i32_1 = arith.constant 0 : i32
    return %c0_i32, %c0_i32_0 : i32, i32
  }
}

</mosaic_0001>

<bundles_post_ra>
// kernel: tpu_custom_call.1
= control target key start
LH: loop header
LB: loop body
LE: loop exit
PB: predicated region body
PF: predicated region fallthrough
CT: control target
= control target key end

     0   :  { %9 = vsyncpa [#allocation9], 0  ;;  %s1524_s15 = smov 0   ;;  %s1863_s0 = inlined_call_operand.vmem [shape: bf16[96,32], index: 0, kind: input, shape index: {}]   ;;  %s1864_s1 = inlined_call_operand.vmem [shape: bf16[32,512], index: 1, kind: input, shape index: {}]   ;;  %s1865_s2 = inlined_call_operand.hbm [shape: bf16[128,512], index: 2, kind: input, shape index: {}]   ;;  %s1866_s3 = inlined_call_operand.vmem [shape: f32[1,512], index: 3, kind: input, shape index: {}]   ;;  %s1867_s4 = inlined_call_operand.hbm [shape: f32[8,128], index: 4, kind: output, shape index: {}]  }
   0x1 LB: > { %s1530_s16 = sadd.s32 4294967295, %s1493_s15   ;;  %p1225_p0 = scmp.ge.s32.totalorder %s1493_s15, 1  ;;  %s1493_s15 = sphi %s1524_s15, %s15_s15  }
   0x2   : > { %p111_p1 = scmp.lt.s32.totalorder %s1493_s15, 4 }
   0x4   : > { %p112_p2 = pnand %p1225_p0, %p111_p1 }
   0x6   : > { %115 = sbr.rel (%p112_p2) target bundleno = 1105 (0x451), region = 28 }
   0xb   : > { %s1535_s17 = sshll.u32 %s1530_s16, 2  ;;  %p1228_p4 = scmp.ne.s32.totalorder %s1530_s16, 0 }
   0xc   : > { %p129_p3 = scmp.lt.s32.totalorder %s1535_s17, 11 }
   0xd   : > { %138 = sbr.rel (%p1228_p4) target bundleno = 38 (0x26), region = 32 }
   0xe   : > { %s130_s18 = scalar_select %p129_p3, %s1535_s17, 11 }
  0x10   : > { %s1227_s19 = sshll.u32 %s130_s18, 2 }
  0x11   : > { %s1542_s22 = scalar_lea.vmem %s1863_s0, %s1227_s19 }
  0x12   : > { %v172_v0 = vld [vmem:[%s1864_s1] sm:$0xff]  ;;  %v174_v1 = vld [vmem:[%s1864_s1 + $0x8] sm:$0xff]  ;;  %v176_v2 = vld [vmem:[%s1864_s1 + $0x10] sm:$0xff] }
  0x13   : > { %173 = vst [vmem:[#allocation3 + $0x30] sm:$0xff] %v172_v0  ;;  %175 = vst [vmem:[#allocation3] sm:$0xff] %v174_v1  ;;  %v178_v3 = vld [vmem:[%s1864_s1 + $0x18] sm:$0xff]  ;;  %v180_v4 = vld [vmem:[%s1864_s1 + $0x20] sm:$0xff] }
  0x14   : > { %177 = vst [vmem:[#allocation3 + $0x18] sm:$0xff] %v176_v2  ;;  %v182_v5 = vld [vmem:[%s1864_s1 + $0x28] sm:$0xff]  ;;  %179 = vst [vmem:[#allocation3 + $0x10] sm:$0xff] %v178_v3  ;;  %v184_v6 = vld [vmem:[%s1864_s1 + $0x30] sm:$0xff] }
  0x15   : > { %181 = vst [vmem:[#allocation3 + $0x8] sm:$0xff] %v180_v4  ;;  %183 = vst [vmem:[#allocation3 + $0x20] sm:$0xff] %v182_v5  ;;  %v186_v7 = vld [vmem:[%s1864_s1 + $0x38] sm:$0xff] }
  0x16   : > { %185 = vst [vmem:[#allocation3 + $0x28] sm:$0xff] %v184_v6  ;;  %187 = vst [vmem:[#allocation3 + $0x38] sm:$0xff] %v186_v7 }
  0x17   : > { %195 = vsyncadd [#allocation7], 1024  ;;  %s1495_s13 = smov [#allocation4]   ;;  %v1496_v8 = vmov 0.0  }
  0x18   : > { %s204_s14 = sshll.u32 %s1495_s13, 4  ;;  %208 = vst [vmem:[#allocation5] sm:$0xff] %v1496_v8  ;;  %209 = vst [vmem:[#allocation6] sm:$0xff] %v1496_v8  ;;  %s205_s14 = int_to_ptr.vmem [resolvable:$true] %s204_s14 }
  0x19   : > { %s1443_s18 = scalar_lea.vmem %s205_s14, 4096  ;;  %p1448_p6 = scmp.lt.s32.totalorder %s205_s14, %s205_s14 }
  0x1a   : > { %p1444_p5 = scmp.ne.s32.totalorder %s205_s14, %s1443_s18  ;;  %p1449_p7 = scmp.lt.s32.totalorder %s1443_s18, %s1443_s18 }
  0x1c   : > { %p1450_p8 = por %p1449_p7, %p1448_p6 }
  0x1e   : > { %p1451_p9 = pnand %p1450_p8, %p1444_p5 }
  0x20   : > { %1454 = shalt.err (!%p1451_p9)  }
  0x21   : > { %207 = dma.hbm_to_vmem [thread:$0]  %s1865_s2, 4096, %s205_s14, [#allocation7 + $0x1] }
  0x22   : > { %1483 = dma.done.wait [#allocation7], 1024 }
  0x23   : > { %1484 = vsyncadd [#allocation7], 4294966272 }
  0x24   : > { %1485 = dma.done.wait [#allocation7 + $0x1], 4096 }
  0x25   : > { %1486 = vsyncadd [#allocation7 + $0x1], 4294963200 }
  0x26 PF: > { %v226_v9 = vld [vmem:[#allocation3 + $0x8] sm:$0xff]  ;;  %v1312_v12 = vld [vmem:[#allocation3 + $0x24] ss:$24 sps:$4 sm:$0xff]   ;;  %v1314_v14 = vld [vmem:[#allocation3 + $0x20] ss:$24 sps:$4 sm:$0xff]   ;;  %v1868_v15 = vmov 0   ;;  %v232_v56 = vlaneseq }
  0x27   : > { %v228_v10 = vld [vmem:[#allocation3 + $0x28] sm:$0xff]  ;;  %341 = vmatprep.mubr.bf16.mxu0 %v1868_v15  ;;  %394 = vmatprep.mubr.bf16.mxu1 %v1868_v15  ;;  %v1315_v16 = vld [vmem:[#allocation3 + $0x34] ss:$-24 sps:$4 sm:$0xff]   ;;  %v1319_v18 = vld [vmem:[#allocation3 + $0x30] ss:$-24 sps:$4 sm:$0xff]   ;;  %vm302_vm0 = vcmask 261120  }
  0x28   : > { %v1236_v11 = vcombine.high %v226_v9, %v228_v10  ;;  %v1235_v13 = vcombine.low %v226_v9, %v228_v10  ;;  %374 = vmatprep.subr.bf16.mxu1 %v1312_v12  ;;  %v1317_v17 = vld [vmem:[#allocation3 + $0x4] ss:$16 sps:$4 sm:$0xff]   ;;  %v1320_v19 = vld [vmem:[#allocation3] ss:$16 sps:$4 sm:$0xff]   ;;  %v1577_v22 = vld [vmem:[#allocation4 + $0xec] ss:$16 sps:$4 sm:$0xff]  }
  0x29   : > { %375 = vmatpush1.bf16.msra.mxu1 %v1314_v14  ;;  %v1321_v20 = vld [vmem:[%s1542_s22] sm:$0xff]   ;;  %v1581_v24 = vld [vmem:[#allocation4 + $0xe8] ss:$16 sps:$4 sm:$0xff]   ;;  %v1587_v26 = vld [vmem:[#allocation4 + $0xcc] ss:$16 sps:$4 sm:$0xff]   ;;  %v233_v57 = vshrl.u32 %v232_v56, 7 }
  0x2a   : > { %321 = vmatprep.subr.bf16.mxu0 %v1236_v11  ;;  %376 = vmatprep.subr.bf16.mxu1 %v1317_v17  ;;  %v1575_v21 = vld [vmem:[#allocation4 + $0xe4] ss:$16 sps:$4 sm:$0xff]   ;;  %v1579_v23 = vld [vmem:[#allocation4 + $0xe0] ss:$16 sps:$4 sm:$0xff]   ;;  %v1595_v28 = vld [vmem:[#allocation4 + $0xc8] ss:$16 sps:$4 sm:$0xff]  }
  0x2b   : > { %322 = vmatpush1.bf16.msra.mxu0 %v1235_v13  ;;  %v1585_v25 = vld [vmem:[#allocation4 + $0xc4] ss:$16 sps:$4 sm:$0xff]   ;;  %v1591_v27 = vld [vmem:[#allocation4 + $0xc0] ss:$16 sps:$4 sm:$0xff]   ;;  %v1601_v30 = vld [vmem:[#allocation4 + $0xac] ss:$16 sps:$4 sm:$0xff]  }
  0x2c   : > { %323 = vmatprep.subr.bf16.mxu0 %v1315_v16  ;;  %v1599_v29 = vld [vmem:[#allocation4 + $0xa4] ss:$16 sps:$4 sm:$0xff]   ;;  %v1605_v31 = vld [vmem:[#allocation4 + $0xa0] ss:$16 sps:$4 sm:$0xff]   ;;  %v1607_v32 = vld [vmem:[#allocation4 + $0xa8] ss:$16 sps:$4 sm:$0xff]  }
  0x2d   : > { %377 = vmatpush1.bf16.msra.mxu1 %v1320_v19  ;;  %v1611_v33 = vld [vmem:[#allocation4 + $0x84] ss:$16 sps:$4 sm:$0xff]   ;;  %v1615_v34 = vld [vmem:[#allocation4 + $0x8c] ss:$16 sps:$4 sm:$0xff]   ;;  %v1617_v35 = vld [vmem:[#allocation4 + $0x80] ss:$16 sps:$4 sm:$0xff]  }
  0x2e   : > { %675 = vmatprep.subr.bf16.mxu1 %v1577_v22  ;;  %v1619_v36 = vld [vmem:[#allocation4 + $0x88] ss:$16 sps:$4 sm:$0xff]   ;;  %v1624_v38 = vld [vmem:[#allocation4 + $0x64] ss:$16 sps:$4 sm:$0xff]   ;;  %v1628_v39 = vld [vmem:[#allocation4 + $0x6c] ss:$16 sps:$4 sm:$0xff]  }
  0x2f   : > { %324 = vmatpush1.bf16.msra.mxu0 %v1319_v18  ;;  %v1352_v37 = vld [vmem:[%s1542_s22 + $0x8] sm:$0xff]   ;;  %v1632_v40 = vld [vmem:[#allocation4 + $0x60] ss:$16 sps:$4 sm:$0xff]   ;;  %v1640_v42 = vld [vmem:[#allocation4 + $0x44] ss:$16 sps:$4 sm:$0xff]   ;;  %v242_v58 = vsub.s32 2, %v233_v57 }
  0x30   : > { %634 = vmatprep.subr.bf16.mxu0 %v1575_v21  ;;  %1241 = vmatmul.mubr.msk.bf16.vlgmr.msra.gmra.mxu1 %vm302_vm0, %v1321_v20  ;;  %v1638_v41 = vld [vmem:[#allocation4 + $0x68] ss:$16 sps:$4 sm:$0xff]   ;;  %v1644_v43 = vld [vmem:[#allocation4 + $0x4c] ss:$16 sps:$4 sm:$0xff]   ;;  %v1648_v44 = vld [vmem:[#allocation4 + $0x40] ss:$16 sps:$4 sm:$0xff]  }
  0x31   : > { %676 = vmatpush1.bf16.msra.mxu1 %v1581_v24  ;;  %404 = vmatprep.mubr.bf16.mxu1 %v1868_v15  ;;  %v1650_v45 = vld [vmem:[#allocation4 + $0x48] ss:$16 sps:$4 sm:$0xff]   ;;  %v1654_v46 = vld [vmem:[#allocation4 + $0x24] ss:$16 sps:$4 sm:$0xff]   ;;  %v1656_v47 = vld [vmem:[#allocation4 + $0x2c] ss:$16 sps:$4 sm:$0xff]  }
  0x32   : > { %1239 = vmatmul.mubr.msk.bf16.vlgmr.msra.gmra.mxu0 %vm302_vm0, %v1321_v20  ;;  %677 = vmatprep.subr.bf16.mxu1 %v1587_v26  ;;  %v1660_v48 = vld [vmem:[#allocation4 + $0x20] ss:$16 sps:$4 sm:$0xff]   ;;  %v1662_v49 = vld [vmem:[#allocation4 + $0x28] ss:$16 sps:$4 sm:$0xff]   ;;  %v1666_v50 = vld [vmem:[#allocation4 + $0x4] ss:$16 sps:$4 sm:$0xff]  }
  0x33   : > { %635 = vmatpush1.bf16.msra.mxu0 %v1579_v23  ;;  %351 = vmatprep.mubr.bf16.mxu0 %v1868_v15  ;;  %v1668_v51 = vld [vmem:[#allocation4 + $0xc] ss:$16 sps:$4 sm:$0xff]   ;;  %v1672_v52 = vld [vmem:[#allocation4] ss:$16 sps:$4 sm:$0xff]   ;;  %v1674_v53 = vld [vmem:[#allocation4 + $0x8] ss:$16 sps:$4 sm:$0xff]  }
  0x34   : > { %636 = vmatprep.subr.bf16.mxu0 %v1585_v25  ;;  %v1676_v54 = vld [vmem:[#allocation5] sm:$0xff]  ;;  %v234_v59 = vsub.s32 0, %v233_v57  ;;  %v246_v60 = vsub.s32 3, %v233_v57  ;;  %v238_v0 = vsub.s32 1, %v233_v57  ;;  %p744_p10 = scmp.lt.s32.totalorder %s1535_s17, 10  ;;  %s874_s26 = sadd.s32 1, %s1535_s17 }
  0x35   : > { %678 = vmatpush1.bf16.msra.mxu1 %v1595_v28  ;;  %v441_v55 = vpack.c.bf16 %v1676_v54, %v1676_v54  ;;  %v230_v61 = vld [vmem:[%s1866_s3] sm:$0xf]  ;;  %p875_p11 = scmp.lt.s32.totalorder %s874_s26, 10  ;;  %s1005_s30 = sadd.s32 2, %s1535_s17 }
  0x36   : > { %679 = vmatprep.subr.bf16.mxu1 %v1601_v30  ;;  %v243_v1 = vrot.slane %v230_v61, %v242_v58  ;;  %v235_v4 = vrot.slane %v230_v61, %v234_v59  ;;  %v247_v5 = vrot.slane %v230_v61, %v246_v60  ;;  %v239_v8 = vrot.slane %v230_v61, %v238_v0  ;;  %s745_s23 = scalar_select %p744_p10, 1, 0 }
  0x37   : > { %637 = vmatpush1.bf16.msra.mxu0 %v1591_v27  ;;  %s876_s27 = scalar_select %p875_p11, 1, 0 }
  0x38   : > { %638 = vmatprep.subr.bf16.mxu0 %v1599_v29  ;;  %1242 = vmatmul.mubr.msk.bf16.gmra.mxu1 %vm302_vm0, %v1352_v37  ;;  %s746_s24 = scvt.s32.f32 %s745_s23  ;;  %p1006_p12 = scmp.lt.s32.totalorder %s1005_s30, 10 }
  0x39   : > { %680 = vmatpush1.bf16.msra.mxu1 %v1607_v32  ;;  %707 = vmatprep.mubr.bf16.mxu1 %v1868_v15  ;;  %s877_s28 = scvt.s32.f32 %s876_s27  ;;  %s1136_s8 = sadd.s32 3, %s1535_s17 }
  0x3a   : > { %681 = vmatprep.subr.bf16.mxu1 %v1615_v34  ;;  %1240 = vmatmul.mubr.msk.bf16.gmra.mxu0 %vm302_vm0, %v1352_v37  ;;  %s749_s25 = ssub.f32 1.0, %s746_s24  ;;  %p1137_p13 = scmp.lt.s32.totalorder %s1136_s8, 10 }
  0x3b   : > { %639 = vmatpush1.bf16.msra.mxu0 %v1605_v31  ;;  %666 = vmatprep.mubr.bf16.mxu0 %v1868_v15  ;;  %s880_s29 = ssub.f32 1.0, %s877_s28  ;;  %s1498_s17 = smov [#allocation8]  }
  0x3c   : > { %640 = vmatprep.subr.bf16.mxu0 %v1611_v33  ;;  %s1007_s5 = scalar_select %p1006_p12, 1, 0 }
  0x3d   : > { %682 = vmatpush1.bf16.msra.mxu1 %v1619_v36  ;;  %s1138_s9 = scalar_select %p1137_p13, 1, 0 }
  0x3e   : > { %683 = vmatprep.subr.bf16.mxu1 %v1628_v39  ;;  %s1008_s6 = scvt.s32.f32 %s1007_s5  ;;  %s1159_s12 = sshll.u32 %s1498_s17, 4  ;;  %s1160_s12 = int_to_ptr.vmem [resolvable:$true] %s1159_s12 }
  0x3f   : > { %641 = vmatpush1.bf16.msra.mxu0 %v1617_v35  ;;  %s1139_s10 = scvt.s32.f32 %s1138_s9  ;;  %p1298_p0 = scmp.eq.s32.totalorder %s1530_s16, 2 }
  0x40   : > { %642 = vmatprep.subr.bf16.mxu0 %v1624_v38  ;;  %s1011_s7 = ssub.f32 1.0, %s1008_s6  ;;  %s1455_s13 = scalar_lea.vmem %s1160_s12, 128 }
  0x41   : > { %684 = vmatpush1.bf16.msra.mxu1 %v1638_v41  ;;  %s1142_s11 = ssub.f32 1.0, %s1139_s10  ;;  %p1456_p1 = scmp.ne.s32.totalorder %s1160_s12, %s1455_s13 }
  0x42   : > { %685 = vmatprep.subr.bf16.mxu1 %v1644_v43  ;;  %p1462_p4 = scmp.lt.s32.totalorder %s1160_s12, %s1160_s12  ;;  %p1463_p5 = scmp.lt.s32.totalorder %s1455_s13, %s1455_s13 }
  0x43   : > { %643 = vmatpush1.bf16.msra.mxu0 %v1632_v40  ;;  %p1457_p2 = pnand %p1456_p1, %p1298_p0 }
  0x44   : > { %644 = vmatprep.subr.bf16.mxu0 %v1640_v42  ;;  %p1464_p6 = por %p1463_p5, %p1462_p4 }
  0x45   : > { %686 = vmatpush1.bf16.msra.mxu1 %v1650_v45  ;;  %p1458_p3 = pneg %p1457_p2 }
  0x46   : > { %687 = vmatprep.subr.bf16.mxu1 %v1656_v47 }
  0x47   : > { %645 = vmatpush1.bf16.msra.mxu0 %v1648_v44  ;;  %p1465_p7 = pnand %p1464_p6, %p1458_p3 }
  0x48   : > { %646 = vmatprep.subr.bf16.mxu0 %v1654_v46 }
  0x49   : > { %688 = vmatpush1.bf16.msra.mxu1 %v1662_v49 }
  0x4a   : > { %689 = vmatprep.subr.bf16.mxu1 %v1668_v51 }
  0x4b   : > { %647 = vmatpush1.bf16.msra.mxu0 %v1660_v48 }
  0x4c   : > { %648 = vmatprep.subr.bf16.mxu0 %v1666_v50 }
  0x4d   : > { %690 = vmatpush1.bf16.msra.mxu1 %v1674_v53 }
  0x4e   : > { %805 = vmatprep.subr.bf16.mxu1 %v1577_v22 }
  0x4f   : > { %649 = vmatpush1.bf16.msra.mxu0 %v1672_v52 }
  0x50   : > { %764 = vmatprep.subr.bf16.mxu0 %v1575_v21  ;;  %708 = vmatmul.mubr.bf16.vlgmr.msra.gmra.mxu1 %v441_v55 }
  0x51   : > { %806 = vmatpush1.bf16.msra.mxu1 %v1581_v24  ;;  %837 = vmatprep.mubr.bf16.mxu1 %v1868_v15 }
  0x52   : > { %667 = vmatmul.mubr.bf16.vlgmr.msra.gmra.mxu0 %v441_v55  ;;  %807 = vmatprep.subr.bf16.mxu1 %v1587_v26 }
  0x53   : > { %765 = vmatpush1.bf16.msra.mxu0 %v1579_v23  ;;  %796 = vmatprep.mubr.bf16.mxu0 %v1868_v15 }
  0x54   : > { %766 = vmatprep.subr.bf16.mxu0 %v1585_v25 }
  0x55   : > { %808 = vmatpush1.bf16.msra.mxu1 %v1595_v28 }
  0x56   : > { %809 = vmatprep.subr.bf16.mxu1 %v1601_v30 }
  0x57   : > { %767 = vmatpush1.bf16.msra.mxu0 %v1591_v27 }
  0x58   : > { %768 = vmatprep.subr.bf16.mxu0 %v1599_v29 }
  0x59   : > { %810 = vmatpush1.bf16.msra.mxu1 %v1607_v32 }
  0x5a   : > { %811 = vmatprep.subr.bf16.mxu1 %v1615_v34 }
  0x5b   : > { %769 = vmatpush1.bf16.msra.mxu0 %v1605_v31 }
  0x5c   : > { %770 = vmatprep.subr.bf16.mxu0 %v1611_v33 }
  0x5d   : > { %812 = vmatpush1.bf16.msra.mxu1 %v1619_v36 }
  0x5e   : > { %813 = vmatprep.subr.bf16.mxu1 %v1628_v39 }
  0x5f   : > { %771 = vmatpush1.bf16.msra.mxu0 %v1617_v35 }
  0x60   : > { %772 = vmatprep.subr.bf16.mxu0 %v1624_v38 }
  0x61   : > { %814 = vmatpush1.bf16.msra.mxu1 %v1638_v41 }
  0x62   : > { %815 = vmatprep.subr.bf16.mxu1 %v1644_v43 }
  0x63   : > { %773 = vmatpush1.bf16.msra.mxu0 %v1632_v40 }
  0x64   : > { %774 = vmatprep.subr.bf16.mxu0 %v1640_v42 }
  0x65   : > { %816 = vmatpush1.bf16.msra.mxu1 %v1650_v45 }
  0x66   : > { %817 = vmatprep.subr.bf16.mxu1 %v1656_v47 }
  0x67   : > { %775 = vmatpush1.bf16.msra.mxu0 %v1648_v44 }
  0x68   : > { %776 = vmatprep.subr.bf16.mxu0 %v1654_v46 }
  0x69   : > { %818 = vmatpush1.bf16.msra.mxu1 %v1662_v49 }
  0x6a   : > { %819 = vmatprep.subr.bf16.mxu1 %v1668_v51 }
  0x6b   : > { %777 = vmatpush1.bf16.msra.mxu0 %v1660_v48 }
  0x6c   : > { %778 = vmatprep.subr.bf16.mxu0 %v1666_v50 }
  0x6d   : > { %820 = vmatpush1.bf16.msra.mxu1 %v1674_v53 }
  0x6e   : > { %936 = vmatprep.subr.bf16.mxu1 %v1577_v22 }
  0x6f   : > { %779 = vmatpush1.bf16.msra.mxu0 %v1672_v52 }
  0x70   : > { %895 = vmatprep.subr.bf16.mxu0 %v1575_v21 }
  0xf0   : > { %v396_v63 = vpop.f32.mrf.mxu1 }
  0xf2   : > { %v343_v62 = vpop.f32.mrf.mxu0  ;;  %v398_v3 = vpop.f32.mrf.mxu1 }
  0xf4   : > { %v345_v2 = vpop.f32.mrf.mxu0  ;;  %v400_v7 = vpop.f32.mrf.mxu1 }
  0xf5   : > { %v1725_v10 = vadd.f32 %v400_v7, %v243_v1 }
  0xf6   : > { %v347_v6 = vpop.f32.mrf.mxu0  ;;  %v402_v12 = vpop.f32.mrf.mxu1 }
  0xf7   : > { %v1723_v9 = vadd.f32 %v347_v6, %v235_v4  ;;  %v1729_v14 = vadd.f32 %v402_v12, %v247_v5 }
  0xf8   : > { %v349_v11 = vpop.f32.mrf.mxu0  ;;  %v406_v17 = vpop.f32.mrf.mxu1 }
  0xf9   : > { %v1727_v13 = vadd.f32 %v349_v11, %v239_v8  ;;  %v1733_v19 = vadd.f32 %v406_v17, %v243_v1  ;;  %v344_v11 = vadd.f32 %v343_v62, %v235_v4  ;;  %v346_v17 = vadd.f32 %v345_v2, %v239_v8 }
  0xfa   : > { %v353_v16 = vpop.f32.mrf.mxu0  ;;  %v408_v37 = vpop.f32.mrf.mxu1 }
  0xfb   : > { %v1731_v18 = vadd.f32 %v353_v16, %v235_v4  ;;  %1870 = vst [vmem:[#allocation18_spill] sm:$0xff] %v1733_v19  ;;  %v1737_v56 = vadd.f32 %v408_v37, %v247_v5 }
  0xfc   : > { %v355_v20 = vpop.f32.mrf.mxu0  ;;  %v410_v58 = vpop.f32.mrf.mxu1 }
  0xfd   : > { %v1735_v55 = vadd.f32 %v355_v20, %v239_v8  ;;  %1872 = vst [vmem:[#allocation20_spill] sm:$0xff] %v1737_v56  ;;  %v1741_v60 = vadd.f32 %v410_v58, %v243_v1 }
  0xfe   : > { %v357_v57 = vpop.f32.mrf.mxu0  ;;  %v412_v0 = vpop.f32.mrf.mxu1 }
  0xff   : > { %1871 = vst [vmem:[#allocation19_spill] sm:$0xff] %v1735_v55  ;;  %v1739_v59 = vadd.f32 %v357_v57, %v235_v4  ;;  %1874 = vst [vmem:[#allocation22_spill] sm:$0xff] %v1741_v60  ;;  %v1745_v7 = vadd.f32 %v412_v0, %v247_v5 }
 0x100   : > { %v359_v61 = vpop.f32.mrf.mxu0 }
 0x101   : > { %1873 = vst [vmem:[#allocation21_spill] sm:$0xff] %v1739_v59  ;;  %v1743_v6 = vadd.f32 %v359_v61, %v239_v8  ;;  %1876 = vst [vmem:[#allocation24_spill] sm:$0xff] %v1745_v7  ;;  %v399_v61 = vadd.f32 %v398_v3, %v247_v5  ;;  %v397_v7 = vadd.f32 %v396_v63, %v243_v1  ;;  %v750_v1 = vstv %s749_s25 }
 0x103   : > { %1875 = vst [vmem:[#allocation23_spill] sm:$0xff] %v1743_v6 }
 0x110   : > { %v709_v16 = vpop.f32.mrf.mxu1 }
 0x111   : > { %v718_v6 = vadd.f32 %v709_v16, %v397_v7  ;;  %v747_v7 = vstv %s746_s24 }
 0x112   : > { %v668_v12 = vpop.f32.mrf.mxu0  ;;  %v711_v37 = vpop.f32.mrf.mxu1 }
 0x113   : > { %v716_v20 = vadd.f32 %v668_v12, %v344_v11  ;;  %v719_v0 = vadd.f32 %v711_v37, %v399_v61 }
 0x114   : > { %v670_v15 = vpop.f32.mrf.mxu0  ;;  %v713_v57 = vpop.f32.mrf.mxu1 }
 0x115   : > { %v1276_v19 = vmul.f32 -1.442695, %v716_v20  ;;  %v717_v56 = vadd.f32 %v670_v15, %v346_v17  ;;  %v1278_v62 = vmul.f32 -1.442695, %v719_v0  ;;  %v751_v57 = vmul.f32 %v750_v1, %v1676_v54 }
 0x116   : > { %v672_v55 = vpop.f32.mrf.mxu0  ;;  %v714_v59 = vpop.f32.mrf.mxu1 }
 0x117   : > { %1371 = vpow2.f32 %v1276_v19  ;;  %v1277_v58 = vmul.f32 -1.442695, %v717_v56  ;;  %v433_v56 = vld [vmem:[#allocation6] sm:$0xff] }
 0x118   : > { %v673_v60 = vpop.f32.mrf.mxu0  ;;  %v754_v12 = vmul.f32 %v750_v1, %v433_v56 }
 0x119   : > { %1373 = vpow2.f32 %v1277_v58 }
 0x11a   : > { %1375 = vpow2.f32 %v1278_v62  ;;  %v1877_v62 = vmov 0  }
 0x124   : > { %v1372_v4 = vpop.eup %1371 }
 0x125   : > { %v723_v2 = vadd.f32 1.0, %v1372_v4 }
 0x126   : > { %v1374_v8 = vpop.eup %1373 }
 0x127   : > { %1377 = vrcp.f32 %v723_v2  ;;  %v729_v15 = vadd.f32 1.0, %v1374_v8  ;;  %v1376_v19 = vpop.eup %1375 }
 0x128   : > { %1379 = vtanh.f32 %v718_v6  ;;  %v736_v63 = vadd.f32 1.0, %v1376_v19 }
 0x129   : > { %1381 = vrcp.f32 %v729_v15 }
 0x12a   : > { %1383 = vrcp.f32 %v736_v63 }
 0x134   : > { %v1378_v55 = vpop.eup %1377 }
 0x135   : > { %v1380_v3 = vpop.eup %1379 }
 0x136   : > { %v1382_v5 = vpop.eup %1381  ;;  %v740_v59 = vmul.f32 %v1380_v3, %v1378_v55 }
 0x137   : > { %v739_v60 = vmul.f32 %v1382_v5, %v433_v56  ;;  %v1384_v17 = vpop.eup %1383 }
 0x139   : > { %v741_v11 = vadd.f32 %v740_v59, %v739_v60 }
 0x13b   : > { %1385 = vtanh.f32 %v741_v11  ;;  %v753_v16 = vmul.f32 %v747_v7, %v741_v11 }
 0x13d   : > { %v1748_v6 = vadd.f32 %v754_v12, %v753_v16 }
 0x148   : > { %v1386_v20 = vpop.eup %1385 }
 0x149   : > { %v743_v37 = vmul.f32 %v1386_v20, %v1384_v17 }
 0x14b   : > { %v748_v58 = vmul.f32 %v747_v7, %v743_v37  ;;  %v878_v37 = vstv %s877_s28 }
 0x14d   : > { %v1751_v61 = vadd.f32 %v751_v57, %v748_v58  ;;  %v881_v57 = vstv %s880_s29 }
 0x14f   : > { %v763_v0 = vpack.c.bf16 %v1751_v61, %v1751_v61 }
 0x151   : > { %797 = vmatmul.mubr.bf16.vlgmr.msra.gmra.mxu0 %v763_v0  ;;  %838 = vmatmul.mubr.bf16.vlgmr.msra.gmra.mxu1 %v763_v0 }
 0x152   : > { %896 = vmatpush1.bf16.msra.mxu0 %v1579_v23  ;;  %937 = vmatpush1.bf16.msra.mxu1 %v1581_v24 }
 0x153   : > { %897 = vmatprep.subr.bf16.mxu0 %v1585_v25  ;;  %938 = vmatprep.subr.bf16.mxu1 %v1587_v26 }
 0x154   : > { %927 = vmatprep.mubr.bf16.mxu0 %v1877_v62  ;;  %968 = vmatprep.mubr.bf16.mxu1 %v1877_v62 }
 0x156   : > { %898 = vmatpush1.bf16.msra.mxu0 %v1591_v27  ;;  %939 = vmatpush1.bf16.msra.mxu1 %v1595_v28 }
 0x157   : > { %899 = vmatprep.subr.bf16.mxu0 %v1599_v29  ;;  %940 = vmatprep.subr.bf16.mxu1 %v1601_v30 }
 0x15a   : > { %900 = vmatpush1.bf16.msra.mxu0 %v1605_v31  ;;  %941 = vmatpush1.bf16.msra.mxu1 %v1607_v32 }
 0x15b   : > { %901 = vmatprep.subr.bf16.mxu0 %v1611_v33  ;;  %942 = vmatprep.subr.bf16.mxu1 %v1615_v34 }
 0x15e   : > { %902 = vmatpush1.bf16.msra.mxu0 %v1617_v35  ;;  %943 = vmatpush1.bf16.msra.mxu1 %v1619_v36 }
 0x15f   : > { %903 = vmatprep.subr.bf16.mxu0 %v1624_v38  ;;  %944 = vmatprep.subr.bf16.mxu1 %v1628_v39 }
 0x162   : > { %904 = vmatpush1.bf16.msra.mxu0 %v1632_v40  ;;  %945 = vmatpush1.bf16.msra.mxu1 %v1638_v41 }
 0x163   : > { %905 = vmatprep.subr.bf16.mxu0 %v1640_v42  ;;  %946 = vmatprep.subr.bf16.mxu1 %v1644_v43 }
 0x166   : > { %906 = vmatpush1.bf16.msra.mxu0 %v1648_v44  ;;  %947 = vmatpush1.bf16.msra.mxu1 %v1650_v45 }
 0x167   : > { %907 = vmatprep.subr.bf16.mxu0 %v1654_v46  ;;  %948 = vmatprep.subr.bf16.mxu1 %v1656_v47 }
 0x16a   : > { %908 = vmatpush1.bf16.msra.mxu0 %v1660_v48  ;;  %949 = vmatpush1.bf16.msra.mxu1 %v1662_v49 }
 0x16b   : > { %909 = vmatprep.subr.bf16.mxu0 %v1666_v50  ;;  %950 = vmatprep.subr.bf16.mxu1 %v1668_v51 }
 0x16e   : > { %910 = vmatpush1.bf16.msra.mxu0 %v1672_v52  ;;  %951 = vmatpush1.bf16.msra.mxu1 %v1674_v53 }
 0x16f   : > { %1026 = vmatprep.subr.bf16.mxu0 %v1575_v21  ;;  %1067 = vmatprep.subr.bf16.mxu1 %v1577_v22 }
 0x211   : > { %v798_v54 = vpop.f32.mrf.mxu0  ;;  %v839_v4 = vpop.f32.mrf.mxu1 }
 0x212   : > { %v846_v2 = vadd.f32 %v798_v54, %v1723_v9  ;;  %v848_v22 = vadd.f32 %v839_v4, %v1725_v10  ;;  %v885_v54 = vmul.f32 %v881_v57, %v1748_v6 }
 0x213   : > { %v800_v8 = vpop.f32.mrf.mxu0  ;;  %v841_v15 = vpop.f32.mrf.mxu1 }
 0x214   : > { %v1279_v19 = vmul.f32 -1.442695, %v846_v2  ;;  %v847_v55 = vadd.f32 %v800_v8, %v1727_v13  ;;  %v849_v21 = vadd.f32 %v841_v15, %v1729_v14 }
 0x215   : > { %v802_v56 = vpop.f32.mrf.mxu0  ;;  %v843_v3 = vpop.f32.mrf.mxu1 }
 0x216   : > { %1387 = vpow2.f32 %v1279_v19  ;;  %v1280_v5 = vmul.f32 -1.442695, %v847_v55  ;;  %v1281_v59 = vmul.f32 -1.442695, %v849_v21  ;;  %v882_v55 = vmul.f32 %v881_v57, %v1751_v61 }
 0x217   : > { %v803_v63 = vpop.f32.mrf.mxu0  ;;  %v844_v1 = vpop.f32.mrf.mxu1 }
 0x218   : > { %1389 = vpow2.f32 %v1280_v5 }
 0x219   : > { %1391 = vtanh.f32 %v848_v22 }
 0x21a   : > { %1393 = vpow2.f32 %v1281_v59 }
 0x223   : > { %v1388_v60 = vpop.eup %1387 }
 0x224   : > { %v853_v9 = vadd.f32 1.0, %v1388_v60 }
 0x225   : > { %v1390_v7 = vpop.eup %1389 }
 0x226   : > { %1395 = vrcp.f32 %v853_v9  ;;  %v859_v13 = vadd.f32 1.0, %v1390_v7  ;;  %v1392_v11 = vpop.eup %1391 }
 0x227   : > { %v1394_v12 = vpop.eup %1393 }
 0x228   : > { %1397 = vrcp.f32 %v859_v13  ;;  %v866_v10 = vadd.f32 1.0, %v1394_v12 }
 0x22a   : > { %1399 = vrcp.f32 %v866_v10  ;;  %v1882_v10 = vld [vmem:[#allocation23_spill] sm:$0xff] }
 0x233   : > { %v1396_v16 = vpop.eup %1395 }
 0x234   : > { %v870_v14 = vmul.f32 %v1396_v16, %v1392_v11  ;;  %v1881_v11 = vld [vmem:[#allocation21_spill] sm:$0xff] }
 0x235   : > { %v1398_v17 = vpop.eup %1397 }
 0x236   : > { %v869_v20 = vmul.f32 %v1398_v17, %v1748_v6 }
 0x237   : > { %v1400_v2 = vpop.eup %1399 }
 0x238   : > { %v871_v58 = vadd.f32 %v870_v14, %v869_v20 }
 0x23a   : > { %1401 = vtanh.f32 %v871_v58  ;;  %v884_v0 = vmul.f32 %v878_v37, %v871_v58 }
 0x23c   : > { %v1796_v4 = vadd.f32 %v885_v54, %v884_v0 }
 0x247   : > { %v1402_v8 = vpop.eup %1401 }
 0x248   : > { %v873_v15 = vmul.f32 %v1402_v8, %v1400_v2  ;;  %v1884_v8 = vld [vmem:[#allocation22_spill] sm:$0xff] }
 0x24a   : > { %v879_v19 = vmul.f32 %v878_v37, %v873_v15 }
 0x24c   : > { %v1799_v56 = vadd.f32 %v882_v55, %v879_v19 }
 0x24e   : > { %v894_v3 = vpack.c.bf16 %v1799_v56, %v1799_v56 }
 0x250   : > { %928 = vmatmul.mubr.bf16.vlgmr.msra.gmra.mxu0 %v894_v3  ;;  %969 = vmatmul.mubr.bf16.vlgmr.msra.gmra.mxu1 %v894_v3 }
 0x251   : > { %1027 = vmatpush1.bf16.msra.mxu0 %v1579_v23  ;;  %1068 = vmatpush1.bf16.msra.mxu1 %v1581_v24 }
 0x252   : > { %1028 = vmatprep.subr.bf16.mxu0 %v1585_v25  ;;  %1069 = vmatprep.subr.bf16.mxu1 %v1587_v26 }
 0x253   : > { %1058 = vmatprep.mubr.bf16.mxu0 %v1877_v62  ;;  %1099 = vmatprep.mubr.bf16.mxu1 %v1877_v62 }
 0x255   : > { %1029 = vmatpush1.bf16.msra.mxu0 %v1591_v27  ;;  %1070 = vmatpush1.bf16.msra.mxu1 %v1595_v28 }
 0x256   : > { %1030 = vmatprep.subr.bf16.mxu0 %v1599_v29  ;;  %1071 = vmatprep.subr.bf16.mxu1 %v1601_v30  ;;  %v1878_v29 = vld [vmem:[#allocation19_spill] sm:$0xff] }
 0x259   : > { %1031 = vmatpush1.bf16.msra.mxu0 %v1605_v31  ;;  %1072 = vmatpush1.bf16.msra.mxu1 %v1607_v32 }
 0x25a   : > { %1032 = vmatprep.subr.bf16.mxu0 %v1611_v33  ;;  %1073 = vmatprep.subr.bf16.mxu1 %v1615_v34 }
 0x25d   : > { %1033 = vmatpush1.bf16.msra.mxu0 %v1617_v35  ;;  %1074 = vmatpush1.bf16.msra.mxu1 %v1619_v36  ;;  %v1879_v36 = vld [vmem:[#allocation20_spill] sm:$0xff] }
 0x25e   : > { %1034 = vmatprep.subr.bf16.mxu0 %v1624_v38  ;;  %1075 = vmatprep.subr.bf16.mxu1 %v1628_v39  ;;  %v1880_v39 = vld [vmem:[#allocation18_spill] sm:$0xff] }
 0x261   : > { %1035 = vmatpush1.bf16.msra.mxu0 %v1632_v40  ;;  %1076 = vmatpush1.bf16.msra.mxu1 %v1638_v41 }
 0x262   : > { %1036 = vmatprep.subr.bf16.mxu0 %v1640_v42  ;;  %1077 = vmatprep.subr.bf16.mxu1 %v1644_v43 }
 0x265   : > { %1037 = vmatpush1.bf16.msra.mxu0 %v1648_v44  ;;  %1078 = vmatpush1.bf16.msra.mxu1 %v1650_v45 }
 0x266   : > { %1038 = vmatprep.subr.bf16.mxu0 %v1654_v46  ;;  %1079 = vmatprep.subr.bf16.mxu1 %v1656_v47 }
 0x269   : > { %1039 = vmatpush1.bf16.msra.mxu0 %v1660_v48  ;;  %1080 = vmatpush1.bf16.msra.mxu1 %v1662_v49 }
 0x26a   : > { %1040 = vmatprep.subr.bf16.mxu0 %v1666_v50  ;;  %1081 = vmatprep.subr.bf16.mxu1 %v1668_v51 }
 0x26d   : > { %1041 = vmatpush1.bf16.msra.mxu0 %v1672_v52  ;;  %1082 = vmatpush1.bf16.msra.mxu1 %v1674_v53  ;;  %v1009_v53 = vstv %s1008_s6 }
 0x310   : > { %v929_v23 = vpop.f32.mrf.mxu0  ;;  %v970_v24 = vpop.f32.mrf.mxu1 }
 0x311   : > { %v977_v25 = vadd.f32 %v929_v23, %v1731_v18  ;;  %v979_v40 = vadd.f32 %v970_v24, %v1880_v39  ;;  %v1012_v18 = vstv %s1011_s7 }
 0x312   : > { %v931_v26 = vpop.f32.mrf.mxu0  ;;  %v972_v27 = vpop.f32.mrf.mxu1  ;;  %v1016_v62 = vmul.f32 %v1012_v18, %v1796_v4  ;;  %v1013_v59 = vmul.f32 %v1012_v18, %v1799_v56 }
 0x313   : > { %v1282_v28 = vmul.f32 -1.442695, %v977_v25  ;;  %v978_v30 = vadd.f32 %v931_v26, %v1878_v29  ;;  %v980_v38 = vadd.f32 %v972_v27, %v1879_v36 }
 0x314   : > { %v933_v31 = vpop.f32.mrf.mxu0  ;;  %v974_v32 = vpop.f32.mrf.mxu1 }
 0x315   : > { %1403 = vpow2.f32 %v1282_v28  ;;  %v1283_v33 = vmul.f32 -1.442695, %v978_v30  ;;  %v1284_v41 = vmul.f32 -1.442695, %v980_v38  ;;  %v1140_v31 = vstv %s1139_s10 }
 0x316   : > { %v934_v34 = vpop.f32.mrf.mxu0  ;;  %v975_v35 = vpop.f32.mrf.mxu1  ;;  %v1143_v32 = vstv %s1142_s11 }
 0x317   : > { %1405 = vpow2.f32 %v1283_v33 }
 0x318   : > { %1407 = vtanh.f32 %v979_v40 }
 0x319   : > { %1409 = vpow2.f32 %v1284_v41 }
 0x322   : > { %v1404_v42 = vpop.eup %1403 }
 0x323   : > { %v984_v43 = vadd.f32 1.0, %v1404_v42 }
 0x324   : > { %v1406_v44 = vpop.eup %1405 }
 0x325   : > { %1411 = vrcp.f32 %v984_v43  ;;  %v990_v45 = vadd.f32 1.0, %v1406_v44  ;;  %v1408_v46 = vpop.eup %1407 }
 0x326   : > { %v1410_v47 = vpop.eup %1409 }
 0x327   : > { %1413 = vrcp.f32 %v990_v45  ;;  %v997_v51 = vadd.f32 1.0, %v1410_v47 }
 0x329   : > { %1415 = vrcp.f32 %v997_v51 }
 0x332   : > { %v1412_v48 = vpop.eup %1411 }
 0x333   : > { %v1001_v49 = vmul.f32 %v1412_v48, %v1408_v46 }
 0x334   : > { %v1414_v50 = vpop.eup %1413 }
 0x335   : > { %v1000_v52 = vmul.f32 %v1414_v50, %v1796_v4  ;;  %v1883_v4 = vld [vmem:[#allocation24_spill] sm:$0xff] }
 0x336   : > { %v1416_v63 = vpop.eup %1415 }
 0x337   : > { %v1002_v6 = vadd.f32 %v1001_v49, %v1000_v52 }
 0x339   : > { %1417 = vtanh.f32 %v1002_v6  ;;  %v1015_v61 = vmul.f32 %v1009_v53, %v1002_v6 }
 0x33b   : > { %v1017_v5 = vadd.f32 %v1016_v62, %v1015_v61 }
 0x33d   : > { %v1147_v35 = vmul.f32 %v1143_v32, %v1017_v5 }
 0x346   : > { %v1418_v1 = vpop.eup %1417 }
 0x347   : > { %v1004_v21 = vmul.f32 %v1418_v1, %v1416_v63 }
 0x349   : > { %v1010_v22 = vmul.f32 %v1009_v53, %v1004_v21 }
 0x34b   : > { %v1014_v60 = vadd.f32 %v1013_v59, %v1010_v22 }
 0x34d   : > { %v1025_v9 = vpack.c.bf16 %v1014_v60, %v1014_v60  ;;  %v1144_v42 = vmul.f32 %v1143_v32, %v1014_v60 }
 0x34f   : > { %1059 = vmatmul.mubr.bf16.vlgmr.msra.gmra.mxu0 %v1025_v9  ;;  %1100 = vmatmul.mubr.bf16.vlgmr.msra.gmra.mxu1 %v1025_v9 }
 0x40f   : > { %v1060_v7 = vpop.f32.mrf.mxu0  ;;  %v1101_v13 = vpop.f32.mrf.mxu1 }
 0x410   : > { %v1108_v12 = vadd.f32 %v1060_v7, %v1881_v11  ;;  %v1110_v15 = vadd.f32 %v1101_v13, %v1884_v8 }
 0x411   : > { %v1062_v16 = vpop.f32.mrf.mxu0  ;;  %v1103_v14 = vpop.f32.mrf.mxu1 }
 0x412   : > { %v1285_v17 = vmul.f32 -1.442695, %v1108_v12  ;;  %v1109_v20 = vadd.f32 %v1062_v16, %v1882_v10  ;;  %v1111_v2 = vadd.f32 %v1103_v14, %v1883_v4 }
 0x413   : > { %v1064_v37 = vpop.f32.mrf.mxu0  ;;  %v1105_v57 = vpop.f32.mrf.mxu1 }
 0x414   : > { %1419 = vpow2.f32 %v1285_v17  ;;  %v1286_v58 = vmul.f32 -1.442695, %v1109_v20  ;;  %v1287_v19 = vmul.f32 -1.442695, %v1111_v2 }
 0x415   : > { %v1065_v0 = vpop.f32.mrf.mxu0  ;;  %v1106_v54 = vpop.f32.mrf.mxu1 }
 0x416   : > { %1421 = vpow2.f32 %v1286_v58 }
 0x417   : > { %1423 = vtanh.f32 %v1110_v15 }
 0x418   : > { %1425 = vpow2.f32 %v1287_v19 }
 0x421   : > { %v1420_v55 = vpop.eup %1419 }
 0x422   : > { %v1115_v56 = vadd.f32 1.0, %v1420_v55 }
 0x423   : > { %v1422_v3 = vpop.eup %1421 }
 0x424   : > { %1427 = vrcp.f32 %v1115_v56  ;;  %v1121_v23 = vadd.f32 1.0, %v1422_v3  ;;  %v1424_v24 = vpop.eup %1423 }
 0x425   : > { %v1426_v25 = vpop.eup %1425 }
 0x426   : > { %1429 = vrcp.f32 %v1121_v23  ;;  %v1128_v29 = vadd.f32 1.0, %v1426_v25 }
 0x428   : > { %1431 = vrcp.f32 %v1128_v29 }
 0x431   : > { %v1428_v26 = vpop.eup %1427 }
 0x432   : > { %v1132_v27 = vmul.f32 %v1428_v26, %v1424_v24 }
 0x433   : > { %v1430_v28 = vpop.eup %1429 }
 0x434   : > { %v1131_v30 = vmul.f32 %v1430_v28, %v1017_v5 }
 0x435   : > { %v1432_v38 = vpop.eup %1431 }
 0x436   : > { %v1133_v33 = vadd.f32 %v1132_v27, %v1131_v30 }
 0x438   : > { %1433 = vtanh.f32 %v1133_v33  ;;  %v1146_v34 = vmul.f32 %v1140_v31, %v1133_v33 }
 0x43a   : > { %v1148_v36 = vadd.f32 %v1147_v35, %v1146_v34 }
 0x43c   : > { %1150 = vst [vmem:[#allocation6] sm:$0xff] %v1148_v36 }
 0x445   : > { %v1434_v39 = vpop.eup %1433 }
 0x446   : > { %v1135_v40 = vmul.f32 %v1434_v39, %v1432_v38 }
 0x448   : > { %v1141_v41 = vmul.f32 %v1140_v31, %v1135_v40 }
 0x44a   : > { %v1145_v43 = vadd.f32 %v1144_v42, %v1141_v41 }
 0x44c   : > { %1149 = vst [vmem:[#allocation5] sm:$0xff] %v1145_v43  ;;  %1151 = vst [vmem:[#allocation8] sm:$0xff] %v1145_v43 }
 0x44d   : > { %1468 = shalt.err (!%p1465_p7)
}
 0x44e   : > { %1295 = dma.vmem_to_hbm [thread:$0]  (%p1298_p0), %s1160_s12, 128, %s1867_s4, [#allocation9]  }
 0x44f   : > { %1488 = dma.done.wait (%p1298_p0), [#allocation9], 128  }
 0x450   : > { %1490 = vsyncadd (%p1298_p0), [#allocation9], 4294967168 }
 0x451 PF: > { %s15_s15 = sadd.s32 1, %s1493_s15  }
 0x452   : > { %p12_p8 = scmp.ge.s32.totalorder %s15_s15, 5  }
 0x454   :  { %14 = sbr.rel (!%p12_p8) target bundleno = 1 (0x1), region = 111 }
 0x459   :  { %1172 = vsyncpa [#allocation9], 1 }
 0x45a   :  { %1174 = vsyncpa [#allocation9 + $0x1], 1 }
 0x45b   :  { %1175 = vsyncmov [#allocation7] }
 0x45e   :  { %s1176_s19 = vpop.sfrf %1175 }
 0x45f   :  { %p1292_p9 = scmp.ne.s32.totalorder %s1176_s19, 0 }
 0x461   :  { %1180 = shalt.err (%p1292_p9)  }
 0x462   :  { %1182 = vsyncmov [#allocation7 + $0x1] }
 0x465   :  { %s1183_s20 = vpop.sfrf %1182 }
 0x466   :  { %p1293_p10 = scmp.ne.s32.totalorder %s1183_s20, 0 }
 0x468   :  { %1187 = shalt.err (%p1293_p10)  }

</bundles_post_ra>
